<compile_context>
chip_gen: v7x
topology: tpu7x:2x2x1
jax: 0.10.0
libtpu: 0.0.40
codegen_flags: <defaults>
</compile_context>

<pallas_src>
import functools
import math

import jax
import jax.numpy as jnp
from jax import lax
from jax.experimental import pallas as pl
from jax.experimental.pallas import tpu as pltpu


def _round_up(x, m):
    return ((x + m - 1) // m) * m


def _arc_margin_loss_kernel(margin, scale, num_classes, tile_c, mxu_dtype,
                            feat_ref, w_ref, label_ref, loss_ref,
                            den_acc, cos_t_acc):
    k = pl.program_id(1)
    num_k = pl.num_programs(1)

    @pl.when(k == 0)
    def _():
        den_acc[...] = jnp.zeros_like(den_acc)
        cos_t_acc[...] = jnp.zeros_like(cos_t_acc)

    f = feat_ref[...].astype(jnp.float32)              # (TN, D)
    w = w_ref[...].astype(jnp.float32)                 # (TC, D)
    labels = label_ref[...]                            # (TN, 1) int32

    # F.normalize(x, dim=1): x * rsqrt(max(sum(x^2), eps^2))  (EUP rsqrt + vmul)
    eps2 = 1e-24                                       # (1e-12)^2
    fn = f * lax.rsqrt(jnp.maximum(jnp.sum(f * f, axis=1, keepdims=True), eps2))
    wn = w * lax.rsqrt(jnp.maximum(jnp.sum(w * w, axis=1, keepdims=True), eps2))

    # cos tile: contract the last dims directly (no weight transpose copy).
    cos = lax.dot_general(
        fn.astype(mxu_dtype), wn.astype(mxu_dtype),
        dimension_numbers=(((1,), (1,)), ((), ())),
        preferred_element_type=jnp.float32)            # (TN, TC) f32

    tn, tc = cos.shape
    class_ids = k * tile_c + lax.broadcasted_iota(jnp.int32, (tn, tc), 1)
    valid = class_ids < num_classes                    # mask padded classes
    is_target = (class_ids == labels) & valid          # per-row one-hot

    # Online accumulation across class tiles:
    #   den_acc   += sum_c exp(scale * cos)   over valid classes
    #   cos_t_acc += cosine at the target class (falls in exactly one tile)
    e_exp = jnp.where(valid, jnp.exp(scale * cos), 0.0)
    den_acc[...] += jnp.sum(e_exp, axis=1, keepdims=True)
    cos_t_acc[...] += jnp.sum(jnp.where(is_target, cos, 0.0),
                              axis=1, keepdims=True)

    @pl.when(k == num_k - 1)
    def _():
        cos_t = cos_t_acc[...]                         # (TN, 1), unclipped
        cos_t_c = jnp.clip(cos_t, -1.0, 1.0)           # clip before sqrt: no NaN
        sin_t = jnp.sqrt(jnp.maximum(1.0 - cos_t_c * cos_t_c, 0.0))
        # cos(theta + m) = cos*cos(m) - sin*sin(m)     (avoids acos)
        cos_margin_t = cos_t_c * math.cos(margin) - sin_t * math.sin(margin)
        logit_t = scale * cos_margin_t
        # Replace the target's plain-exp contribution with the margin exp.
        den = den_acc[...] - jnp.exp(scale * cos_t) + jnp.exp(logit_t)
        # -log(exp(logit_t) / den) = log(den) - logit_t
        # NOTE: plain (non max-subtracted) sum is safe in f32 for scale ~ 30.
        # TODO(synk): switch to an online max-subtracted logsumexp across C
        #             tiles if much larger `scale` values are needed.
        loss_ref[...] = jnp.log(den) - logit_t


def arc_margin_loss(feature, weight, label, *, margin: float, scale: float,
                    tile_n: int = 128, tile_c: int = 512,
                    mxu_dtype=jnp.float32):
    """feature: (N, D), weight: (C, D), label: (N,) int -> scalar f32 loss."""
    n, d = feature.shape
    c, d_w = weight.shape
    assert d == d_w, "feature/weight dim mismatch"

    # Tile sizes: batch tile multiple of 8 (sublanes), class tile multiple of
    # 128 (lane-dense cos tile); shrink for tiny problems.
    tile_n = min(tile_n, _round_up(n, 8))
    tile_c = min(tile_c, _round_up(c, 128))
    n_pad = _round_up(n, tile_n)
    c_pad = _round_up(c, tile_c)

    f32 = jnp.float32
    feature_p = jnp.pad(feature.astype(f32), ((0, n_pad - n), (0, 0)))
    weight_p = jnp.pad(weight.astype(f32), ((0, c_pad - c), (0, 0)))
    label_p = jnp.pad(label.astype(jnp.int32),
                      ((0, n_pad - n),)).reshape(n_pad, 1)

    grid = (n_pad // tile_n, c_pad // tile_c)

    kernel = functools.partial(_arc_margin_loss_kernel, float(margin),
                               float(scale), c, tile_c, mxu_dtype)

    # Rough per-step VMEM footprint (double-buffered tiles + temporaries);
    # keep the scoped limit modest so it stays safe on v7x's 64 MiB VMEM.
    vmem_est = 4 * (2 * (tile_n * d + tile_c * d + 2 * tile_n)
                    + 6 * tile_n * tile_c)
    vmem_limit = int(min(max(vmem_est, 32 * 1024 * 1024), 48 * 1024 * 1024))

    cost = pl.CostEstimate(
        flops=2 * n_pad * c_pad * d,
        transcendentals=n_pad * c_pad + 4 * n_pad,
        bytes_accessed=4 * (n_pad * d + grid[0] * c_pad * d + 3 * n_pad))

    per_sample = pl.pallas_call(
        kernel,
        out_shape=jax.ShapeDtypeStruct((n_pad, 1), jnp.float32),
        grid_spec=pltpu.PrefetchScalarGridSpec(
            num_scalar_prefetch=0,
            grid=grid,
            in_specs=[
                pl.BlockSpec((tile_n, d), lambda i, k: (i, 0)),   # feature
                pl.BlockSpec((tile_c, d), lambda i, k: (k, 0)),   # weight
                pl.BlockSpec((tile_n, 1), lambda i, k: (i, 0)),   # label
            ],
            out_specs=pl.BlockSpec((tile_n, 1), lambda i, k: (i, 0)),
            scratch_shapes=[pltpu.VMEM((tile_n, 1), jnp.float32),   # den
                            pltpu.VMEM((tile_n, 1), jnp.float32)],  # cos_t
        ),
        compiler_params=pltpu.CompilerParams(
            dimension_semantics=("parallel", "arbitrary"),
            vmem_limit_bytes=vmem_limit),
        cost_estimate=cost,
    )(feature_p, weight_p, label_p)

    # Tiny epilogue: masked mean over the real batch rows (mul by 1/n).
    return jnp.sum(per_sample[:n, 0]) * (1.0 / n)


def _reference(feature, weight, label, margin, scale):
    eps = 1e-12
    fn = feature / jnp.maximum(
        jnp.linalg.norm(feature, axis=1, keepdims=True), eps)
    wn = weight / jnp.maximum(
        jnp.linalg.norm(weight, axis=1, keepdims=True), eps)
    cos = fn @ wn.T
    theta = jnp.arccos(jnp.clip(cos, -1.0, 1.0))
    m_exp = jnp.exp(scale * jnp.cos(theta + margin))
    e_exp = jnp.exp(scale * cos)
    one_hot = jax.nn.one_hot(label, weight.shape[0], dtype=jnp.float32)
    num = jnp.sum(one_hot * m_exp, axis=1)
    den = jnp.sum(one_hot * m_exp + (1 - one_hot) * e_exp, axis=1)
    return -jnp.mean(jnp.log(num / den))


if __name__ == "__main__":
    num_classes = 16
    dim = 32
    batch = 8
    margin = 0.5
    scale = 30.0

    key = jax.random.PRNGKey(0)
    k_w, k_f, k_l = jax.random.split(key, 3)

    # nn.init.xavier_uniform_ on (num_classes, dim): bound = sqrt(6/(fan_in+fan_out))
    bound = math.sqrt(6.0 / (dim + num_classes))
    weight = jax.random.uniform(k_w, (num_classes, dim), jnp.float32,
                                -bound, bound)
    feature = jax.random.normal(k_f, (batch, dim), jnp.float32)
    label = jax.random.randint(k_l, (batch,), 0, num_classes, jnp.int32)

    # f32 MXU path: matches the torch/f32 reference tightly.
    loss = arc_margin_loss(feature, weight, label, margin=margin, scale=scale)
    loss = jax.block_until_ready(loss)

    ref = _reference(feature, weight, label, margin, scale)
    assert jnp.allclose(loss, ref, rtol=1e-4, atol=1e-4), (loss, ref)

    # bf16 MXU path (perf option for large class counts): loose sanity check,
    # since scale=30 amplifies bf16 rounding of the cosines.
    loss_bf16 = arc_margin_loss(feature, weight, label, margin=margin,
                                scale=scale, mxu_dtype=jnp.bfloat16)
    loss_bf16 = jax.block_until_ready(loss_bf16)
    assert bool(jnp.isfinite(loss_bf16)), loss_bf16
    assert abs(float(loss_bf16) - float(ref)) < 1.0, (loss_bf16, ref)

    print("KERNEL_OK")
</pallas_src>

<mosaic_0001>
module attributes {stable_mosaic.version = 11 : i64} {
  func.func @_arc_margin_loss_kernel(%arg0: i32, %arg1: i32, %arg2: memref<8x32xf32, #tpu.memory_space<vmem>>, %arg3: memref<128x32xf32, #tpu.memory_space<vmem>>, %arg4: memref<8x1xi32, #tpu.memory_space<vmem>>, %arg5: memref<8x1xf32, #tpu.memory_space<vmem>>, %arg6: memref<8x1xf32, #tpu.memory_space<vmem>>, %arg7: memref<8x1xf32, #tpu.memory_space<vmem>>) attributes {dimension_semantics = [#tpu.dimension_semantics<parallel>, #tpu.dimension_semantics<arbitrary>], iteration_bounds = array<i64: 1, 1>, scalar_prefetch = 0 : i64, scratch_operands = 2 : i64, tpu.core_type = #tpu.core_type<tc>, window_params = [{transform_indices = @transform_0, window_bounds = array<i64: 8, 32>}, {transform_indices = @transform_1, window_bounds = array<i64: 128, 32>}, {transform_indices = @transform_2, window_bounds = array<i64: 8, 1>}, {transform_indices = @transform_3, window_bounds = array<i64: 8, 1>}]} {
    %c0_i32 = arith.constant 0 : i32
    %0 = arith.cmpi eq, %arg1, %c0_i32 : i32
    %1 = arith.extui %0 : i1 to i32
    %c0_i32_0 = arith.constant 0 : i32
    %2 = arith.cmpi ne, %1, %c0_i32_0 : i32
    scf.if %2 {
      %cst_25 = arith.constant 0.000000e+00 : f32
      %52 = vector.broadcast %cst_25 : f32 to vector<8x1xf32>
      %c0_26 = arith.constant 0 : index
      %c0_27 = arith.constant 0 : index
      %53 = vector.load %arg6[%c0_26, %c0_27] : memref<8x1xf32, #tpu.memory_space<vmem>>, vector<8x1xf32>
      tpu.vector_store %arg6[%c0_26, %c0_27], %52 {strides = array<i32>} : memref<8x1xf32, #tpu.memory_space<vmem>>, vector<8x1xf32>,
      %cst_28 = arith.constant 0.000000e+00 : f32
      %54 = vector.broadcast %cst_28 : f32 to vector<8x1xf32>
      %c0_29 = arith.constant 0 : index
      %c0_30 = arith.constant 0 : index
      %55 = vector.load %arg7[%c0_29, %c0_30] : memref<8x1xf32, #tpu.memory_space<vmem>>, vector<8x1xf32>
      tpu.vector_store %arg7[%c0_29, %c0_30], %54 {strides = array<i32>} : memref<8x1xf32, #tpu.memory_space<vmem>>, vector<8x1xf32>,
    } else {
    }
    %c0 = arith.constant 0 : index
    %c0_1 = arith.constant 0 : index
    %3 = vector.load %arg2[%c0, %c0_1] : memref<8x32xf32, #tpu.memory_space<vmem>>, vector<8x32xf32>
    %c0_2 = arith.constant 0 : index
    %c0_3 = arith.constant 0 : index
    %4 = vector.load %arg3[%c0_2, %c0_3] : memref<128x32xf32, #tpu.memory_space<vmem>>, vector<128x32xf32>
    %c0_4 = arith.constant 0 : index
    %c0_5 = arith.constant 0 : index
    %5 = vector.load %arg4[%c0_4, %c0_5] : memref<8x1xi32, #tpu.memory_space<vmem>>, vector<8x1xi32>
    %6 = arith.mulf %3, %3 : vector<8x32xf32>
    %cst = arith.constant dense<0.000000e+00> : vector<8xf32>
    %7 = vector.multi_reduction <add>, %6, %cst [1] : vector<8x32xf32> to vector<8xf32>
    %8 = vector.shape_cast %7 : vector<8xf32> to vector<8x1xf32>
    %cst_6 = arith.constant 1.000000e-24 : f32
    %9 = vector.broadcast %cst_6 : f32 to vector<8x1xf32>
    %10 = arith.maximumf %8, %9 : vector<8x1xf32>
    %11 = math.rsqrt %10 : vector<8x1xf32>
    %12 = vector.broadcast %11 : vector<8x1xf32> to vector<8x32xf32>
    %13 = arith.mulf %3, %12 : vector<8x32xf32>
    %14 = arith.mulf %4, %4 : vector<128x32xf32>
    %cst_7 = arith.constant dense<0.000000e+00> : vector<128xf32>
    %15 = vector.multi_reduction <add>, %14, %cst_7 [1] : vector<128x32xf32> to vector<128xf32>
    %16 = vector.shape_cast %15 : vector<128xf32> to vector<128x1xf32>
    %cst_8 = arith.constant 1.000000e-24 : f32
    %17 = vector.broadcast %cst_8 : f32 to vector<128x1xf32>
    %18 = arith.maximumf %16, %17 : vector<128x1xf32>
    %19 = math.rsqrt %18 : vector<128x1xf32>
    %20 = vector.broadcast %19 : vector<128x1xf32> to vector<128x32xf32>
    %21 = arith.mulf %4, %20 : vector<128x32xf32>
    %cst_9 = arith.constant dense<0.000000e+00> : vector<8x128xf32>
    %22 = tpu.matmul %13, %21, %cst_9 {dimension_numbers = #tpu.dot_dimension_numbers<[1], [1], [0], [0], [0, 0, 1, 0], [], []>} : vector<8x32xf32>, vector<128x32xf32>, vector<8x128xf32> -> vector<8x128xf32>
    %c128_i32 = arith.constant 128 : i32
    %23 = arith.muli %arg1, %c128_i32 : i32
    %24 = tpu.iota {dimensions = array<i32: 1>} : vector<8x128xi32>
    %25 = vector.broadcast %23 : i32 to vector<8x128xi32>
    %26 = arith.addi %25, %24 : vector<8x128xi32>
    %c16_i32 = arith.constant 16 : i32
    %27 = vector.broadcast %c16_i32 : i32 to vector<8x128xi32>
    %28 = arith.cmpi slt, %26, %27 : vector<8x128xi32>
    %29 = vector.broadcast %5 : vector<8x1xi32> to vector<8x128xi32>
    %30 = arith.cmpi eq, %26, %29 : vector<8x128xi32>
    %31 = arith.andi %30, %28 : vector<8x128xi1>
    %cst_10 = arith.constant 3.000000e+01 : f32
    %32 = vector.broadcast %cst_10 : f32 to vector<8x128xf32>
    %33 = arith.mulf %32, %22 : vector<8x128xf32>
    %34 = math.exp %33 : vector<8x128xf32>
    %cst_11 = arith.constant 0.000000e+00 : f32
    %35 = vector.broadcast %cst_11 : f32 to vector<8x128xf32>
    %36 = arith.select %28, %34, %35 : vector<8x128xi1>, vector<8x128xf32>
    %c0_12 = arith.constant 0 : index
    %c0_13 = arith.constant 0 : index
    %37 = vector.load %arg6[%c0_12, %c0_13] : memref<8x1xf32, #tpu.memory_space<vmem>>, vector<8x1xf32>
    %cst_14 = arith.constant dense<0.000000e+00> : vector<8xf32>
    %38 = vector.multi_reduction <add>, %36, %cst_14 [1] : vector<8x128xf32> to vector<8xf32>
    %39 = vector.shape_cast %38 : vector<8xf32> to vector<8x1xf32>
    %40 = arith.addf %37, %39 : vector<8x1xf32>
    %c0_15 = arith.constant 0 : index
    %c0_16 = arith.constant 0 : index
    %41 = vector.load %arg6[%c0_15, %c0_16] : memref<8x1xf32, #tpu.memory_space<vmem>>, vector<8x1xf32>
    tpu.vector_store %arg6[%c0_15, %c0_16], %40 {strides = array<i32>} : memref<8x1xf32, #tpu.memory_space<vmem>>, vector<8x1xf32>,
    %c0_17 = arith.constant 0 : index
    %c0_18 = arith.constant 0 : index
    %42 = vector.load %arg7[%c0_17, %c0_18] : memref<8x1xf32, #tpu.memory_space<vmem>>, vector<8x1xf32>
    %cst_19 = arith.constant 0.000000e+00 : f32
    %43 = vector.broadcast %cst_19 : f32 to vector<8x128xf32>
    %44 = arith.select %31, %22, %43 : vector<8x128xi1>, vector<8x128xf32>
    %cst_20 = arith.constant dense<0.000000e+00> : vector<8xf32>
    %45 = vector.multi_reduction <add>, %44, %cst_20 [1] : vector<8x128xf32> to vector<8xf32>
    %46 = vector.shape_cast %45 : vector<8xf32> to vector<8x1xf32>
    %47 = arith.addf %42, %46 : vector<8x1xf32>
    %c0_21 = arith.constant 0 : index
    %c0_22 = arith.constant 0 : index
    %48 = vector.load %arg7[%c0_21, %c0_22] : memref<8x1xf32, #tpu.memory_space<vmem>>, vector<8x1xf32>
    tpu.vector_store %arg7[%c0_21, %c0_22], %47 {strides = array<i32>} : memref<8x1xf32, #tpu.memory_space<vmem>>, vector<8x1xf32>,
    %c0_i32_23 = arith.constant 0 : i32
    %49 = arith.cmpi eq, %arg1, %c0_i32_23 : i32
    %50 = arith.extui %49 : i1 to i32
    %c0_i32_24 = arith.constant 0 : i32
    %51 = arith.cmpi ne, %50, %c0_i32_24 : i32
    scf.if %51 {
      %c0_25 = arith.constant 0 : index
      %c0_26 = arith.constant 0 : index
      %52 = vector.load %arg7[%c0_25, %c0_26] : memref<8x1xf32, #tpu.memory_space<vmem>>, vector<8x1xf32>
      %cst_27 = arith.constant -1.000000e+00 : f32
      %cst_28 = arith.constant 1.000000e+00 : f32
      %53 = vector.broadcast %cst_27 : f32 to vector<8x1xf32>
      %54 = arith.maximumf %53, %52 : vector<8x1xf32>
      %55 = vector.broadcast %cst_28 : f32 to vector<8x1xf32>
      %56 = arith.minimumf %55, %54 : vector<8x1xf32>
      %57 = arith.mulf %56, %56 : vector<8x1xf32>
      %cst_29 = arith.constant 1.000000e+00 : f32
      %58 = vector.broadcast %cst_29 : f32 to vector<8x1xf32>
      %59 = arith.subf %58, %57 : vector<8x1xf32>
      %cst_30 = arith.constant 0.000000e+00 : f32
      %60 = vector.broadcast %cst_30 : f32 to vector<8x1xf32>
      %61 = arith.maximumf %59, %60 : vector<8x1xf32>
      %62 = math.sqrt %61 : vector<8x1xf32>
      %cst_31 = arith.constant 0.87758255 : f32
      %63 = vector.broadcast %cst_31 : f32 to vector<8x1xf32>
      %64 = arith.mulf %56, %63 : vector<8x1xf32>
      %cst_32 = arith.constant 0.47942555 : f32
      %65 = vector.broadcast %cst_32 : f32 to vector<8x1xf32>
      %66 = arith.mulf %62, %65 : vector<8x1xf32>
      %67 = arith.subf %64, %66 : vector<8x1xf32>
      %cst_33 = arith.constant 3.000000e+01 : f32
      %68 = vector.broadcast %cst_33 : f32 to vector<8x1xf32>
      %69 = arith.mulf %68, %67 : vector<8x1xf32>
      %c0_34 = arith.constant 0 : index
      %c0_35 = arith.constant 0 : index
      %70 = vector.load %arg6[%c0_34, %c0_35] : memref<8x1xf32, #tpu.memory_space<vmem>>, vector<8x1xf32>
      %cst_36 = arith.constant 3.000000e+01 : f32
      %71 = vector.broadcast %cst_36 : f32 to vector<8x1xf32>
      %72 = arith.mulf %71, %52 : vector<8x1xf32>
      %73 = math.exp %72 : vector<8x1xf32>
      %74 = arith.subf %70, %73 : vector<8x1xf32>
      %75 = math.exp %69 : vector<8x1xf32>
      %76 = arith.addf %74, %75 : vector<8x1xf32>
      %77 = math.log %76 : vector<8x1xf32>
      %78 = arith.subf %77, %69 : vector<8x1xf32>
      %c0_37 = arith.constant 0 : index
      %c0_38 = arith.constant 0 : index
      %79 = vector.load %arg5[%c0_37, %c0_38] : memref<8x1xf32, #tpu.memory_space<vmem>>, vector<8x1xf32>
      tpu.vector_store %arg5[%c0_37, %c0_38], %78 {strides = array<i32>} : memref<8x1xf32, #tpu.memory_space<vmem>>, vector<8x1xf32>,
    } else {
    }
    return
  }
  func.func @transform_0(%arg0: i32, %arg1: i32) -> (i32, i32) {
    %c0_i32 = arith.constant 0 : i32
    %c0_i32_0 = arith.constant 0 : i32
    return %arg0, %c0_i32 : i32, i32
  }
  func.func @transform_1(%arg0: i32, %arg1: i32) -> (i32, i32) {
    %c0_i32 = arith.constant 0 : i32
    %c0_i32_0 = arith.constant 0 : i32
    return %arg1, %c0_i32 : i32, i32
  }
  func.func @transform_2(%arg0: i32, %arg1: i32) -> (i32, i32) {
    %c0_i32 = arith.constant 0 : i32
    %c0_i32_0 = arith.constant 0 : i32
    return %arg0, %c0_i32 : i32, i32
  }
  func.func @transform_3(%arg0: i32, %arg1: i32) -> (i32, i32) {
    %c0_i32 = arith.constant 0 : i32
    %c0_i32_0 = arith.constant 0 : i32
    return %arg0, %c0_i32 : i32, i32
  }
}

</mosaic_0001>

<bundles_post_ra>
// kernel: tpu_custom_call.1
= control target key start
LH: loop header
LB: loop body
LE: loop exit
PB: predicated region body
PF: predicated region fallthrough
CT: control target
= control target key end

     0   :  { %vm40_vm0 = vcmask 261120   ;;  %v495_v50 = vmov 0.0|0.0   ;;  %vm18_vm1 = vcmask 7168   ;;  %v496_v52 = vmov 0.0   ;;  %s714_s1 = inlined_call_operand.vmem [shape: f32[128,32], index: 1, kind: input, shape index: {}]   ;;  %s715_s0 = inlined_call_operand.vmem [shape: f32[8,32], index: 0, kind: input, shape index: {}]   ;;  %s716_s2 = inlined_call_operand.vmem [shape: s32[8,1], index: 2, kind: input, shape index: {}]   ;;  %s717_s3 = inlined_call_operand.vmem [shape: f32[8,1], index: 3, kind: output, shape index: {}]  }
   0x1   :  { %v522_v0 = vld [vmem:[%s714_s1] sm:$0xff]  ;;  %v527_v1 = vld [vmem:[%s714_s1 + $0x10] sm:$0xff]  ;;  %v532_v2 = vld [vmem:[%s714_s1 + $0x8] sm:$0xff]  ;;  %413 = vmatprep.subr.bf16.mxu0 %v495_v50  ;;  %19 = vst.msk [vmem:[#allocation2] sm:$0xff] %vm18_vm1, %v496_v52  ;;  %vm497_vm2 = vmmov 0   ;;  %v498_v53 = vmov 0  }
   0x2   :  { %v47_v3 = vmul.f32 %v522_v0, %v522_v0  ;;  %v49_v4 = vmul.f32 %v527_v1, %v527_v1  ;;  %v48_v5 = vmul.f32 %v532_v2, %v532_v2  ;;  %v543_v6 = vld [vmem:[%s714_s1 + $0x18] sm:$0xff]  ;;  %v550_v8 = vld [vmem:[%s714_s1 + $0x28] sm:$0xff]  ;;  %v555_v9 = vld [vmem:[%s714_s1 + $0x20] sm:$0xff]  ;;  %20 = vst.msk [vmem:[#allocation3] sm:$0xff] %vm18_vm1, %v496_v52  ;;  %410 = vmatprep.mubr.msk.f32.mxu0 %vm497_vm2, %v496_v52 }
   0x3   :  { %v50_v7 = vmul.f32 %v543_v6, %v543_v6  ;;  %v52_v14 = vmul.f32 %v550_v8, %v550_v8  ;;  %v51_v15 = vmul.f32 %v555_v9, %v555_v9  ;;  %v568_v16 = vld [vmem:[%s714_s1 + $0x38] sm:$0xff]  ;;  %v573_v17 = vld [vmem:[%s714_s1 + $0x30] sm:$0xff]  ;;  %v584_v22 = vld [vmem:[%s714_s1 + $0x48] sm:$0xff]  ;;  %449 = vset.pattern.permute.xlu1 %v498_v53  ;;  %450 = vset.pattern.permute.xlu0 %v498_v53 }
   0x4   :  { %v63_v10 = vsel %vm40_vm0, %v47_v3, 0.0  ;;  %v69_v11 = vsel %vm40_vm0, %v49_v4, 0.0  ;;  %v66_v12 = vsel %vm40_vm0, %v48_v5, 0.0  ;;  %v54_v20 = vmul.f32 %v568_v16, %v568_v16  ;;  %v589_v23 = vld [vmem:[%s714_s1 + $0x40] sm:$0xff]  ;;  %v600_v28 = vld [vmem:[%s714_s1 + $0x58] sm:$0xff]  ;;  %v605_v29 = vld [vmem:[%s714_s1 + $0x50] sm:$0xff] }
   0x5   :  { %64 = vadd.xlane.f32.xlu0 %v63_v10  ;;  %70 = vadd.xlane.f32.xlu1 %v69_v11  ;;  %v72_v13 = vsel %vm40_vm0, %v50_v7, 0.0  ;;  %v78_v18 = vsel %vm40_vm0, %v52_v14, 0.0  ;;  %v75_v19 = vsel %vm40_vm0, %v51_v15, 0.0  ;;  %v53_v21 = vmul.f32 %v573_v17, %v573_v17  ;;  %v616_v34 = vld [vmem:[%s714_s1 + $0x68] sm:$0xff]  ;;  %v621_v35 = vld [vmem:[%s714_s1 + $0x60] sm:$0xff]  ;;  %v632_v40 = vld [vmem:[%s714_s1 + $0x78] sm:$0xff] }
   0x6   :  { %v84_v24 = vsel %vm40_vm0, %v54_v20, 0.0  ;;  %v56_v26 = vmul.f32 %v584_v22, %v584_v22  ;;  %v55_v27 = vmul.f32 %v589_v23, %v589_v23  ;;  %v58_v32 = vmul.f32 %v600_v28, %v600_v28  ;;  %v637_v41 = vld [vmem:[%s714_s1 + $0x70] sm:$0xff]  ;;  %v648_v46 = vld [vmem:[%s715_s0] sm:$0xff]  ;;  %vm665_vm3 = vmpackc.low %vm40_vm0, %vm40_vm0 }
   0x7   :  { %v81_v25 = vsel %vm40_vm0, %v53_v21, 0.0  ;;  %v57_v33 = vmul.f32 %v605_v29, %v605_v29  ;;  %v60_v38 = vmul.f32 %v616_v34, %v616_v34  ;;  %v59_v39 = vmul.f32 %v621_v35, %v621_v35  ;;  %v38_v54 = vld [vmem:[%s716_s2] sm:$0xff] }
   0x8   :  { %v90_v30 = vsel %vm40_vm0, %v56_v26, 0.0  ;;  %v87_v31 = vsel %vm40_vm0, %v55_v27, 0.0  ;;  %v96_v36 = vsel %vm40_vm0, %v58_v32, 0.0  ;;  %v62_v44 = vmul.f32 %v632_v40, %v632_v40 }
   0x9   :  { %67 = vadd.xlane.f32.xlu0 %v66_v12  ;;  %73 = vadd.xlane.f32.xlu1 %v72_v13  ;;  %v93_v37 = vsel %vm40_vm0, %v57_v33, 0.0  ;;  %v102_v42 = vsel %vm40_vm0, %v60_v38, 0.0  ;;  %v99_v43 = vsel %vm40_vm0, %v59_v39, 0.0  ;;  %v61_v45 = vmul.f32 %v637_v41, %v637_v41 }
   0xa   :  { %v108_v47 = vsel %vm40_vm0, %v62_v44, 0.0  ;;  %v39_v49 = vmul.f32 %v648_v46, %v648_v46 }
   0xb   :  { %v105_v48 = vsel %vm40_vm0, %v61_v45, 0.0 }
   0xc   :  { %v41_v51 = vsel %vm40_vm0, %v39_v49, 0.0 }
   0xd   :  { %79 = vadd.xlane.f32.xlu1 %v78_v18  ;;  %76 = vadd.xlane.f32.xlu0 %v75_v19 }
  0x11   :  { %85 = vadd.xlane.f32.xlu1 %v84_v24  ;;  %82 = vadd.xlane.f32.xlu0 %v81_v25 }
  0x15   :  { %91 = vadd.xlane.f32.xlu1 %v90_v30  ;;  %88 = vadd.xlane.f32.xlu0 %v87_v31 }
  0x19   :  { %97 = vadd.xlane.f32.xlu1 %v96_v36  ;;  %94 = vadd.xlane.f32.xlu0 %v93_v37 }
  0x1d   :  { %103 = vadd.xlane.f32.xlu1 %v102_v42  ;;  %100 = vadd.xlane.f32.xlu0 %v99_v43 }
  0x21   :  { %109 = vadd.xlane.f32.xlu1 %v108_v47  ;;  %106 = vadd.xlane.f32.xlu0 %v105_v48 }
  0x25   :  { %42 = vadd.xlane.f32.xlu0 %v41_v51 }
  0x32   :  { %287 = vperm.xlu1 %449, %v38_v54  }
  0x92   :  { %v65_v55 = vpop.xlane.xlu0 %64  ;;  %v71_v56 = vpop.xlane.xlu1 %70 }
  0x93   :  { %v111_v57 = vmax.f32 %v65_v55, 1e-24  ;;  %v113_v61 = vmax.f32 %v71_v56, 1e-24 }
  0x95   :  { %451 = vrsqrt.f32 %v111_v57 }
  0x96   :  { %v68_v58 = vpop.xlane.xlu0 %67  ;;  %v74_v59 = vpop.xlane.xlu1 %73 }
  0x97   :  { %v112_v60 = vmax.f32 %v68_v58, 1e-24  ;;  %v114_v62 = vmax.f32 %v74_v59, 1e-24 }
  0x99   :  { %453 = vrsqrt.f32 %v112_v60 }
  0x9a   :  { %v80_v63 = vpop.xlane.xlu1 %79  ;;  %455 = vrsqrt.f32 %v113_v61  ;;  %v77_v3 = vpop.xlane.xlu0 %76 }
  0x9b   :  { %457 = vrsqrt.f32 %v114_v62  ;;  %v116_v4 = vmax.f32 %v80_v63, 1e-24  ;;  %v115_v5 = vmax.f32 %v77_v3, 1e-24 }
  0x9d   :  { %459 = vrsqrt.f32 %v116_v4 }
  0x9e   :  { %461 = vrsqrt.f32 %v115_v5  ;;  %v86_v11 = vpop.xlane.xlu1 %85  ;;  %v83_v14 = vpop.xlane.xlu0 %82 }
  0x9f   :  { %v452_v7 = vpop.eup %451  ;;  %v118_v20 = vmax.f32 %v86_v11, 1e-24  ;;  %v117_v24 = vmax.f32 %v83_v14, 1e-24  ;;  %v281_v14 = vlaneseq }
  0xa0   :  { %v143_v12 = vmul.f32 %v452_v7, %v522_v0 }
  0xa1   :  { %463 = vrsqrt.f32 %v118_v20 }
  0xa2   :  { %465 = vrsqrt.f32 %v117_v24  ;;  %v92_v25 = vpop.xlane.xlu1 %91  ;;  %v89_v27 = vpop.xlane.xlu0 %88 }
  0xa3   :  { %v454_v10 = vpop.eup %453  ;;  %v120_v32 = vmax.f32 %v92_v25, 1e-24  ;;  %v119_v33 = vmax.f32 %v89_v27, 1e-24 }
  0xa4   :  { %v144_v13 = vmul.f32 %v454_v10, %v532_v2  ;;  %v456_v18 = vpop.eup %455 }
  0xa5   :  { %v458_v21 = vpop.eup %457  ;;  %v145_v0 = vmul.f32 %v456_v18, %v527_v1  ;;  %467 = vrsqrt.f32 %v120_v32  ;;  %v282_v18 = vand.u32 127, %v281_v14 }
  0xa6   :  { %v414_v19 = vpack.c.bf16 %v144_v13, %v143_v12  ;;  %v146_v2 = vmul.f32 %v458_v21, %v543_v6  ;;  %469 = vrsqrt.f32 %v119_v33  ;;  %v98_v1 = vpop.xlane.xlu1 %97  ;;  %v95_v39 = vpop.xlane.xlu0 %94 }
  0xa7   :  { %v460_v26 = vpop.eup %459  ;;  %v122_v43 = vmax.f32 %v98_v1, 1e-24  ;;  %v121_v44 = vmax.f32 %v95_v39, 1e-24  ;;  %vm285_vm5 = vcmp.lt.s32.totalorder %v282_v18, 16 }
  0xa8   :  { %416 = vmatpush3.bf16.xpose.msk.msra.mxu0 %vm665_vm3, %v414_v19  ;;  %v462_v30 = vpop.eup %461  ;;  %v418_v31 = vpack.c.bf16 %v146_v2, %v145_v0  ;;  %v148_v37 = vmul.f32 %v460_v26, %v550_v8  ;;  %v301_v0 = vld [vmem:[#allocation3] sm:$0xff] }
  0xa9   :  { %417 = vmatprep.subr.bf16.mxu0 %v495_v50  ;;  %v147_v36 = vmul.f32 %v462_v30, %v555_v9  ;;  %471 = vrsqrt.f32 %v122_v43  ;;  %v295_v30 = vld [vmem:[#allocation2] sm:$0xff] }
  0xaa   :  { %473 = vrsqrt.f32 %v121_v44  ;;  %v104_v8 = vpop.xlane.xlu1 %103  ;;  %v101_v49 = vpop.xlane.xlu0 %100 }
  0xab   :  { %v464_v6 = vpop.eup %463  ;;  %v422_v38 = vpack.c.bf16 %v148_v37, %v147_v36  ;;  %v124_v52 = vmax.f32 %v104_v8, 1e-24  ;;  %v123_v53 = vmax.f32 %v101_v49, 1e-24 }
  0xac   :  { %v466_v42 = vpop.eup %465  ;;  %v150_v9 = vmul.f32 %v464_v6, %v568_v16 }
  0xad   :  { %v149_v45 = vmul.f32 %v466_v42, %v573_v17  ;;  %475 = vrsqrt.f32 %v124_v52 }
  0xae   :  { %477 = vrsqrt.f32 %v123_v53  ;;  %v110_v16 = vpop.xlane.xlu1 %109  ;;  %v107_v57 = vpop.xlane.xlu0 %106 }
  0xaf   :  { %v468_v47 = vpop.eup %467  ;;  %v426_v48 = vpack.c.bf16 %v150_v9, %v149_v45  ;;  %v126_v59 = vmax.f32 %v110_v16, 1e-24  ;;  %v125_v60 = vmax.f32 %v107_v57, 1e-24 }
  0xb0   :  { %420 = vmatpush3.bf16.xpose.msk.msra.mxu0 %vm665_vm3, %v418_v31  ;;  %v470_v51 = vpop.eup %469  ;;  %v152_v17 = vmul.f32 %v468_v47, %v584_v22 }
  0xb1   :  { %421 = vmatprep.subr.bf16.mxu0 %v495_v50  ;;  %v151_v54 = vmul.f32 %v470_v51, %v589_v23  ;;  %479 = vrsqrt.f32 %v126_v59 }
  0xb2   :  { %481 = vrsqrt.f32 %v125_v60  ;;  %v43_v3 = vpop.xlane.xlu0 %42  ;;  %v288_v19 = vpop.permute.xlu1 %287 }
  0xb3   :  { %v472_v55 = vpop.eup %471  ;;  %v430_v56 = vpack.c.bf16 %v152_v17, %v151_v54  ;;  %vm289_vm4 = vcmp.eq.s32.totalorder %v282_v18, %v288_v19 }
  0xb4   :  { %v474_v58 = vpop.eup %473  ;;  %v154_v23 = vmul.f32 %v472_v55, %v600_v28  ;;  %vm290_vm6 = vmand %vm289_vm4, %vm285_vm5 }
  0xb5   :  { %v153_v61 = vmul.f32 %v474_v58, %v605_v29  ;;  %v44_v29 = vmax.f32 %v43_v3, 1e-24 }
  0xb7   :  { %v476_v22 = vpop.eup %475  ;;  %v434_v62 = vpack.c.bf16 %v154_v23, %v153_v61  ;;  %483 = vrsqrt.f32 %v44_v29 }
  0xb8   :  { %424 = vmatpush3.bf16.xpose.msk.msra.mxu0 %vm665_vm3, %v422_v38  ;;  %v478_v63 = vpop.eup %477  ;;  %v156_v5 = vmul.f32 %v476_v22, %v616_v34 }
  0xb9   :  { %425 = vmatprep.subr.bf16.mxu0 %v495_v50  ;;  %v155_v4 = vmul.f32 %v478_v63, %v621_v35 }
  0xbb   :  { %v480_v7 = vpop.eup %479  ;;  %v438_v28 = vpack.c.bf16 %v156_v5, %v155_v4 }
  0xbc   :  { %v482_v10 = vpop.eup %481  ;;  %v158_v12 = vmul.f32 %v480_v7, %v632_v40 }
  0xbd   :  { %v157_v11 = vmul.f32 %v482_v10, %v637_v41 }
  0xbf   :  { %v442_v13 = vpack.c.bf16 %v158_v12, %v157_v11 }
  0xc0   :  { %428 = vmatpush3.bf16.xpose.msk.msra.mxu0 %vm665_vm3, %v426_v48 }
  0xc1   :  { %429 = vmatprep.subr.bf16.mxu0 %v495_v50  ;;  %v484_v35 = vpop.eup %483 }
  0xc2   :  { %v46_v34 = vmul.f32 %v484_v35, %v648_v46 }
  0xc8   :  { %432 = vmatpush3.bf16.xpose.msk.msra.mxu0 %vm665_vm3, %v430_v56 }
  0xc9   :  { %433 = vmatprep.subr.bf16.mxu0 %v495_v50 }
  0xd0   :  { %436 = vmatpush3.bf16.xpose.msk.msra.mxu0 %vm665_vm3, %v434_v62 }
  0xd1   :  { %437 = vmatprep.subr.bf16.mxu0 %v495_v50 }
  0xd8   :  { %440 = vmatpush3.bf16.xpose.msk.msra.mxu0 %vm665_vm3, %v438_v28 }
  0xd9   :  { %441 = vmatprep.subr.bf16.mxu0 %v495_v50 }
  0xe0   :  { %444 = vmatpush3.bf16.xpose.msk.msra.mxu0 %vm665_vm3, %v442_v13 }
  0xe7   :  { %411 = vmatmul.mubr.msk.f32.vlgmr.msra.gmra.mrb[0].mxu0 %vm40_vm0, %v46_v34 }
 0x1ba   :  { %v276_v41 = vpop.f32.mrb[0].mxu0 }
 0x1bb   :  { %v291_v20 = vmul.f32 30.0, %v276_v41  ;;  %v412_v40 = vpop.f32.mrb[1].mxu0  ;;  %v302_v21 = vsel %vm290_vm6, %v276_v41, 0.0 }
 0x1bc   :  { %303 = vadd.xlane.f32.xlu0 %v302_v21 }
 0x1bd   :  { %v292_v50 = vmul.f32 1.442695, %v291_v20 }
 0x1bf   :  { %485 = vpow2.f32 %v292_v50 }
 0x1c9   :  { %v486_v24 = vpop.eup %485 }
 0x1ca   :  { %v294_v15 = vsel %vm285_vm5, %v486_v24, 0.0 }
 0x1cb   :  { %296 = vadd.xlane.f32.xlu0 %v294_v15 }
 0x249   :  { %v304_v46 = vpop.xlane.xlu0 %303 }
 0x24a   :  { %v305_v2 = vadd.f32 %v304_v46, %v301_v0 }
 0x24c   :  { %306 = vst.msk [vmem:[#allocation3] sm:$0xff] %vm18_vm1, %v305_v2 }
 0x253   :  { %v310_v25 = vld [vmem:[#allocation3] sm:$0xff] }
 0x254   :  { %v360_v26 = vclamps-f32 %v310_v25, 1.0  ;;  %v328_v6 = vmul.f32 30.0, %v310_v25 }
 0x256   :  { %v313_v27 = vmul.f32 %v360_v26, %v360_v26  ;;  %v323_v43 = vmul.f32 0.87758255, %v360_v26  ;;  %v329_v45 = vmul.f32 1.442695, %v328_v6 }
 0x258   :  { %v314_v31 = vsub.f32 1.0, %v313_v27  ;;  %v297_v32 = vpop.xlane.xlu0 %296 }
 0x259   :  { %v298_v33 = vadd.f32 %v297_v32, %v295_v30 }
 0x25a   :  { %v315_v36 = vmax.f32 %v314_v31, 0.0 }
 0x25b   :  { %300 = vst.msk [vmem:[#allocation2] sm:$0xff] %vm18_vm1, %v298_v33 }
 0x25c   :  { %487 = vrsqrt.f32 %v315_v36  ;;  %vm318_vm7 = vcmp.eq.f32.partialorder %v315_v36, inf  ;;  %v321_v38 = vand.u32 2147483648, %v315_v36  ;;  %vm320_vm8 = vcmp.eq.f32.partialorder %v315_v36, 0.0 }
 0x25d   :  { %489 = vpow2.f32 %v329_v45 }
 0x262   :  { %v327_v49 = vld [vmem:[#allocation2] sm:$0xff] }
 0x266   :  { %v488_v37 = vpop.eup %487 }
 0x267   :  { %v317_v1 = vmul.f32 %v488_v37, %v315_v36  ;;  %v490_v48 = vpop.eup %489 }
 0x268   :  { %v331_v51 = vsub.f32 %v327_v49, %v490_v48 }
 0x269   :  { %v319_v39 = vsel %vm318_vm7, %v315_v36, %v317_v1 }
 0x26a   :  { %v322_v42 = vsel %vm320_vm8, %v321_v38, %v319_v39 }
 0x26b   :  { %v324_v44 = vmul.f32 0.47942555, %v322_v42 }
 0x26d   :  { %v325_v9 = vsub.f32 %v323_v43, %v324_v44 }
 0x26f   :  { %v326_v8 = vmul.f32 30.0, %v325_v9 }
 0x271   :  { %v332_v47 = vmul.f32 1.442695, %v326_v8 }
 0x273   :  { %491 = vpow2.f32 %v332_v47 }
 0x27d   :  { %v492_v52 = vpop.eup %491 }
 0x27e   :  { %v334_v53 = vadd.f32 %v492_v52, %v331_v51 }
 0x280   :  { %493 = vlog2.f32 %v334_v53 }
 0x28a   :  { %v494_v54 = vpop.eup %493 }
 0x28b   :  { %v336_v17 = vmul.f32 0.6931472, %v494_v54 }
 0x28d   :  { %v337_v16 = vsub.f32 %v336_v17, %v326_v8 }
 0x28f   :  { %338 = vst.msk [vmem:[%s717_s3] sm:$0xff] %vm18_vm1, %v337_v16 }

</bundles_post_ra>
